<compile_context>
chip_gen: v5e
topology: v5e:2x2
jax: 0.10.0
libtpu: 0.0.40
codegen_flags: <defaults>
</compile_context>

<pallas_src>
import functools

import jax
import jax.numpy as jnp
from jax.experimental import pallas as pl
from jax.experimental.pallas import tpu as pltpu

_EPS = 1e-8  # nn.CosineSimilarity default eps


def _round_up(x, m):
    return ((x + m - 1) // m) * m


def _largest_divisor_leq(n, cap):
    cap = max(1, min(n, cap))
    for d in range(cap, 0, -1):
        if n % d == 0:
            return d
    return 1


def _cos_loss_kernel(pred_ref, tgt_ref, out_ref, *, hw, tile_hw, eps):
    j = pl.program_id(1)  # spatial-tile index

    p = pred_ref[...].astype(jnp.float32)   # (TN, C, tile_hw)
    t = tgt_ref[...].astype(jnp.float32)    # (TN, C, tile_hw)

    # Reduce over the channel axis (PyTorch dim=1); keep results lane-dense.
    dot = jnp.sum(p * t, axis=1)            # (TN, tile_hw)
    sq_p = jnp.sum(p * p, axis=1)           # (TN, tile_hw)
    sq_t = jnp.sum(t * t, axis=1)           # (TN, tile_hw)

    # ATen formula: w12 / sqrt(clamp_min(w1*w2, eps*eps)); single EUP rsqrt.
    # TODO(synk): very recent PyTorch clamps each norm separately; differs only for
    # near-zero-norm inputs.
    cos = dot * jax.lax.rsqrt(jnp.maximum(sq_p * sq_t, eps * eps))

    # Mask ragged tail lanes with a *select* (padded lanes may hold garbage/NaN;
    # selecting 0.0 prevents propagation). Elided when tiling is exact.
    if hw % tile_hw != 0:
        col = j * tile_hw + jax.lax.broadcasted_iota(jnp.int32, cos.shape, 1)
        cos = jnp.where(col < hw, cos, 0.0)

    # Per-tile partials: each grid point owns its own output block (megacore-safe).
    out_ref[...] = cos


def cosine_similarity_loss(pred, target, *, eps=_EPS, max_tile_hw=32768):
    """loss = 1 - mean(cosine_similarity(pred, target, dim=1)) for NCHW inputs."""
    assert pred.shape == target.shape
    N, C, H, W = pred.shape
    HW = H * W
    itemsize = jnp.dtype(pred.dtype).itemsize

    # Free reshapes (no data movement): NCHW -> (N, C, H*W).
    p3 = pred.reshape(N, C, HW)
    t3 = target.reshape(N, C, HW)

    # Generation-aware VMEM budget (v5e/v6e: 128 MiB, v7x: 64 MiB per TC).
    try:
        vmem_cap = int(pltpu.get_tpu_info().vmem_capacity_bytes)
    except Exception:  # conservative fallback if the query is unavailable
        vmem_cap = 64 * 1024 * 1024
    budget = int(vmem_cap * 0.35)      # target for the double-buffered pipeline footprint
    vmem_limit = int(vmem_cap * 0.6)   # scoped-VMEM limit with headroom

    # Bytes per lane per sample: 2 inputs x 2 pipeline buffers x C x itemsize + 2 x f32 out.
    per_lane = 2 * 2 * C * itemsize + 2 * 4
    hw_padded = _round_up(HW, 128)
    tile_cap = max(128, (budget // per_lane) // 128 * 128)
    tile_hw = min(max_tile_hw, tile_cap, hw_padded)
    n_tiles = pl.cdiv(HW, tile_hw)

    # If one tile already covers the whole spatial extent, batch samples per step
    # to keep each DMA near MiB scale (amortizes per-grid-step overhead).
    if n_tiles == 1:
        tn_cap = max(1, budget // (per_lane * tile_hw))
        TN = _largest_divisor_leq(N, tn_cap)
    else:
        TN = 1

    kernel = functools.partial(_cos_loss_kernel, hw=HW, tile_hw=tile_hw, eps=eps)

    partials = pl.pallas_call(
        kernel,
        out_shape=jax.ShapeDtypeStruct((n_tiles, N, tile_hw), jnp.float32),
        grid_spec=pltpu.PrefetchScalarGridSpec(
            num_scalar_prefetch=0,
            grid=(N // TN, n_tiles),
            in_specs=[
                pl.BlockSpec((TN, C, tile_hw), lambda n, j: (n, 0, j)),
                pl.BlockSpec((TN, C, tile_hw), lambda n, j: (n, 0, j)),
            ],
            out_specs=pl.BlockSpec((None, TN, tile_hw), lambda n, j: (j, n, 0)),
        ),
        compiler_params=pltpu.CompilerParams(
            dimension_semantics=("parallel", "parallel"),
            vmem_limit_bytes=vmem_limit,
        ),
    )(p3, t3)

    # Tiny finalization in XLA: sum of all lane-dense partials, then 1 - mean.
    return 1.0 - jnp.sum(partials) / (N * HW)


def _reference(pred, target, eps=_EPS):
    p = pred.astype(jnp.float32)
    t = target.astype(jnp.float32)
    dot = jnp.sum(p * t, axis=1)
    denom = jnp.sqrt(jnp.maximum(jnp.sum(p * p, axis=1) * jnp.sum(t * t, axis=1),
                                 eps * eps))
    return 1.0 - jnp.mean(dot / denom)


if __name__ == "__main__":
    key = jax.random.PRNGKey(0)
    k1, k2 = jax.random.split(key)
    N, C, H, W = 2, 4, 16, 16
    pred = jax.random.normal(k1, (N, C, H, W), dtype=jnp.float32)
    target = jax.random.normal(k2, (N, C, H, W), dtype=jnp.float32)

    loss = cosine_similarity_loss(pred, target)
    loss = jax.block_until_ready(loss)

    ref = jax.block_until_ready(_reference(pred, target))
    assert jnp.allclose(loss, ref, atol=1e-5, rtol=1e-5), (loss, ref)
    print("KERNEL_OK")
</pallas_src>

<mosaic_0001>
module attributes {stable_mosaic.version = 11 : i64} {
  func.func @_cos_loss_kernel(%arg0: i32, %arg1: i32, %arg2: memref<2x4x256xf32, #tpu.memory_space<vmem>>, %arg3: memref<2x4x256xf32, #tpu.memory_space<vmem>>, %arg4: memref<1x2x256xf32, #tpu.memory_space<vmem>>) attributes {dimension_semantics = [#tpu.dimension_semantics<parallel>, #tpu.dimension_semantics<parallel>], iteration_bounds = array<i64: 1, 1>, scalar_prefetch = 0 : i64, scratch_operands = 0 : i64, tpu.core_type = #tpu.core_type<tc>, window_params = [{transform_indices = @transform_0, window_bounds = array<i64: 2, 4, 256>}, {transform_indices = @transform_1, window_bounds = array<i64: 2, 4, 256>}, {transform_indices = @transform_2, window_bounds = array<i64: 1, 2, 256>}]} {
    %c0 = arith.constant 0 : index
    %c0_0 = arith.constant 0 : index
    %c0_1 = arith.constant 0 : index
    %0 = vector.load %arg2[%c0, %c0_0, %c0_1] : memref<2x4x256xf32, #tpu.memory_space<vmem>>, vector<2x4x256xf32>
    %c0_2 = arith.constant 0 : index
    %c0_3 = arith.constant 0 : index
    %c0_4 = arith.constant 0 : index
    %1 = vector.load %arg3[%c0_2, %c0_3, %c0_4] : memref<2x4x256xf32, #tpu.memory_space<vmem>>, vector<2x4x256xf32>
    %2 = arith.mulf %0, %1 : vector<2x4x256xf32>
    %cst = arith.constant dense<0.000000e+00> : vector<2x256xf32>
    %3 = vector.multi_reduction <add>, %2, %cst [1] : vector<2x4x256xf32> to vector<2x256xf32>
    %4 = arith.mulf %0, %0 : vector<2x4x256xf32>
    %cst_5 = arith.constant dense<0.000000e+00> : vector<2x256xf32>
    %5 = vector.multi_reduction <add>, %4, %cst_5 [1] : vector<2x4x256xf32> to vector<2x256xf32>
    %6 = arith.mulf %1, %1 : vector<2x4x256xf32>
    %cst_6 = arith.constant dense<0.000000e+00> : vector<2x256xf32>
    %7 = vector.multi_reduction <add>, %6, %cst_6 [1] : vector<2x4x256xf32> to vector<2x256xf32>
    %8 = arith.mulf %5, %7 : vector<2x256xf32>
    %cst_7 = arith.constant 1.000000e-16 : f32
    %9 = vector.broadcast %cst_7 : f32 to vector<2x256xf32>
    %10 = arith.maximumf %8, %9 : vector<2x256xf32>
    %11 = math.rsqrt %10 : vector<2x256xf32>
    %12 = arith.mulf %3, %11 : vector<2x256xf32>
    %c0_8 = arith.constant 0 : index
    %c0_9 = arith.constant 0 : index
    %c0_10 = arith.constant 0 : index
    %13 = vector.load %arg4[%c0_8, %c0_9, %c0_10] : memref<1x2x256xf32, #tpu.memory_space<vmem>>, vector<1x2x256xf32>
    %14 = vector.shape_cast %13 : vector<1x2x256xf32> to vector<2x256xf32>
    %15 = vector.shape_cast %12 : vector<2x256xf32> to vector<1x2x256xf32>
    tpu.vector_store %arg4[%c0_8, %c0_9, %c0_10], %15 {strides = array<i32>} : memref<1x2x256xf32, #tpu.memory_space<vmem>>, vector<1x2x256xf32>,
    return
  }
  func.func @transform_0(%arg0: i32, %arg1: i32) -> (i32, i32, i32) {
    %c0_i32 = arith.constant 0 : i32
    %c0_i32_0 = arith.constant 0 : i32
    return %arg0, %c0_i32, %arg1 : i32, i32, i32
  }
  func.func @transform_1(%arg0: i32, %arg1: i32) -> (i32, i32, i32) {
    %c0_i32 = arith.constant 0 : i32
    %c0_i32_0 = arith.constant 0 : i32
    return %arg0, %c0_i32, %arg1 : i32, i32, i32
  }
  func.func @transform_2(%arg0: i32, %arg1: i32) -> (i32, i32, i32) {
    %c0_i32 = arith.constant 0 : i32
    %c0_i32_0 = arith.constant 0 : i32
    return %arg1, %arg0, %c0_i32 : i32, i32, i32
  }
}

</mosaic_0001>

<bundles_post_ra>
// kernel: tpu_custom_call.1
= control target key start
LH: loop header
LB: loop body
LE: loop exit
PB: predicated region body
PF: predicated region fallthrough
CT: control target
= control target key end

     0   :  { %7 = vsyncpa [#allocation3], 0  ;;  %s437_s0 = inlined_call_operand.hbm [shape: f32[2,4,256], index: 0, kind: input, shape index: {}]   ;;  %s438_s1 = inlined_call_operand.hbm [shape: f32[2,4,256], index: 1, kind: input, shape index: {}]   ;;  %s439_s2 = inlined_call_operand.hbm [shape: f32[1,2,256], index: 2, kind: output, shape index: {}]  }
   0x1   :  { %8 = vsyncpa [#allocation6], 0 }
   0x2   :  { %9 = vsyncpa [#allocation4], 0  ;;  %s14_s11 = sshll.u32 %s437_s0, 4  ;;  %s363_s12 = smov [#allocation2]   ;;  %s15_s11 = int_to_ptr.hbm [resolvable:$true] %s14_s11 }
   0x3   :  { %s16_s13 = sshll.u32 %s363_s12, 4  ;;  %s27_s16 = sshll.u32 %s438_s1, 4  ;;  %s17_s13 = int_to_ptr.vmem [resolvable:$true] %s16_s13  ;;  %s28_s16 = int_to_ptr.hbm [resolvable:$true] %s27_s16 }
   0x4   :  { %s364_s17 = smov 128   ;;  %s365_s18 = smov 8  }
   0x5   :  { %22 = dma.hbm_to_vmem [thread:$0]  %s15_s11, 256, %s17_s13, [#allocation3], %s364_s17, %s364_s17, %s365_s18  }
   0x6   :  { %s366_s19 = smov [#allocation5]  }
   0x7   :  { %s29_s20 = sshll.u32 %s366_s19, 4  ;;  %s30_s20 = int_to_ptr.vmem [resolvable:$true] %s29_s20 }
   0x8   :  { %35 = dma.hbm_to_vmem [thread:$0]  %s28_s16, 256, %s30_s20, [#allocation6], %s364_s17, %s364_s17, %s365_s18  }
   0x9   :  { %357 = dma.done.wait [#allocation3], 256  }
   0xa   :  { %358 = vsyncadd [#allocation3], 4294967040 }
   0xb   :  { %359 = dma.done.wait [#allocation6], 256  }
   0xc   :  { %360 = vsyncadd [#allocation6], 4294967040  ;;  %v44_v0 = vld [vmem:[#allocation2] sm:$0xff]  ;;  %v46_v1 = vld [vmem:[#allocation5] sm:$0xff]  ;;  %vm63_vm0 = vcmask 1043456   ;;  %vm236_vm13 = vcmask 1041408  }
   0xd   :  { %v45_v2 = vld [vmem:[#allocation2 + $0x8] sm:$0xff]  ;;  %v48_v3 = vmul.f32 %v46_v1, %v44_v0  ;;  %v47_v4 = vld [vmem:[#allocation5 + $0x8] sm:$0xff]  ;;  %v92_v6 = vmul.f32 %v44_v0, %v44_v0  ;;  %v135_v12 = vmul.f32 %v46_v1, %v46_v1  ;;  %vm244_vm14 = vcmask 1041409   ;;  %s367_s0 = smov [#allocation7]   ;;  %s261_s23 = sshll.u32 %s439_s2, 4  ;;  %s262_s23 = int_to_ptr.hbm [resolvable:$true] %s261_s23 }
   0xe   :  { %v49_v5 = vmul.f32 %v47_v4, %v45_v2  ;;  %v93_v7 = vmul.f32 %v45_v2, %v45_v2  ;;  %v136_v14 = vmul.f32 %v47_v4, %v47_v4  ;;  %vm246_vm15 = vcmask 1043459   ;;  %s259_s1 = sshll.u32 %s367_s0, 4  ;;  %s260_s1 = int_to_ptr.vmem [resolvable:$true] %s259_s1 }
   0xf   :  { %52 = vst [vmem:[#allocation1] ss:$2 sm:$0xff] %v48_v3 }
  0x10   :  { %56 = vst [vmem:[#allocation1 + $0x10] ss:$2 sm:$0xff] %v49_v5 }
  0x16   :  { %v389_v8 = vld.sshfl [vmem:[#allocation1] sm:$0xff pattern:$0x75316420]  ;;  %v54_v9 = vld.sshfl [vmem:[#allocation1 + $0x8] sm:$0xff pattern:$0x75316420] }
  0x17   :  { %96 = vst [vmem:[#allocation1] ss:$2 sm:$0xff] %v92_v6  ;;  %v391_v10 = vld.sshfl [vmem:[#allocation1 + $0x10] sm:$0xff pattern:$0x75316420]  ;;  %v71_v63 = vsel %vm63_vm0, %v54_v9, 0.0 }
  0x18   :  { %v393_v11 = vld.sshfl [vmem:[#allocation1 + $0x18] sm:$0xff pattern:$0x75316420] }
  0x19   :  { %100 = vst [vmem:[#allocation1 + $0x10] ss:$2 sm:$0xff] %v93_v7 }
  0x1e   :  { %v97_v13 = vld.sshfl [vmem:[#allocation1] sm:$0xff pattern:$0x75316420]  ;;  %v98_v15 = vld.sshfl [vmem:[#allocation1 + $0x8] sm:$0xff pattern:$0x75316420] }
  0x1f   :  { %v107_v16 = vsel %vm63_vm0, %v97_v13, 0.0  ;;  %139 = vst [vmem:[#allocation1] ss:$2 sm:$0xff] %v135_v12  ;;  %v114_v18 = vsel %vm63_vm0, %v98_v15, 0.0 }
  0x20   :  { %v108_v17 = vrot.slane %v107_v16, 4  ;;  %v101_v19 = vld.sshfl [vmem:[#allocation1 + $0x10] sm:$0xff pattern:$0x75316420]  ;;  %v115_v22 = vrot.slane %v114_v18, 4 }
  0x21   :  { %v102_v20 = vld.sshfl [vmem:[#allocation1 + $0x18] sm:$0xff pattern:$0x75316420]  ;;  %v121_v23 = vsel %vm63_vm0, %v101_v19, 0.0 }
  0x22   :  { %v109_v21 = vadd.f32 %v108_v17, %v107_v16  ;;  %v128_v24 = vsel %vm63_vm0, %v102_v20, 0.0  ;;  %143 = vst [vmem:[#allocation1 + $0x10] ss:$2 sm:$0xff] %v136_v14  ;;  %v122_v25 = vrot.slane %v121_v23, 4  ;;  %v116_v27 = vadd.f32 %v115_v22, %v114_v18 }
  0x23   :  { %v129_v26 = vrot.slane %v128_v24, 4  ;;  %v85_v14 = vsel %vm63_vm0, %v393_v11, 0.0  ;;  %v72_v17 = vrot.slane %v71_v63, 4 }
  0x24   :  { %v123_v28 = vadd.f32 %v122_v25, %v121_v23  ;;  %v110_v29 = vrot.slane %v109_v21, 2  ;;  %v117_v32 = vrot.slane %v116_v27, 2  ;;  %v78_v23 = vsel %vm63_vm0, %v391_v10, 0.0 }
  0x25   :  { %v130_v31 = vadd.f32 %v129_v26, %v128_v24  ;;  %v86_v24 = vrot.slane %v85_v14, 4 }
  0x26   :  { %v140_v30 = vld.sshfl [vmem:[#allocation1] sm:$0xff pattern:$0x75316420]  ;;  %v141_v33 = vld.sshfl [vmem:[#allocation1 + $0x8] sm:$0xff pattern:$0x75316420]  ;;  %v111_v40 = vadd.f32 %v110_v29, %v109_v21  ;;  %v118_v45 = vadd.f32 %v117_v32, %v116_v27 }
  0x27   :  { %v150_v34 = vsel %vm63_vm0, %v140_v30, 0.0  ;;  %v157_v36 = vsel %vm63_vm0, %v141_v33, 0.0  ;;  %v124_v38 = vrot.slane %v123_v28, 2  ;;  %v131_v42 = vrot.slane %v130_v31, 2 }
  0x28   :  { %v151_v35 = vrot.slane %v150_v34, 4  ;;  %v158_v37 = vrot.slane %v157_v36, 4  ;;  %v112_v54 = vrot.slane %v111_v40, 1  ;;  %v119_v58 = vrot.slane %v118_v45, 1 }
  0x29   :  { %v144_v39 = vld.sshfl [vmem:[#allocation1 + $0x10] sm:$0xff pattern:$0x75316420]  ;;  %v145_v43 = vld.sshfl [vmem:[#allocation1 + $0x18] sm:$0xff pattern:$0x75316420]  ;;  %v125_v52 = vadd.f32 %v124_v38, %v123_v28  ;;  %v132_v56 = vadd.f32 %v131_v42, %v130_v31  ;;  %v73_v28 = vadd.f32 %v72_v17, %v71_v63  ;;  %v87_v33 = vadd.f32 %v86_v24, %v85_v14 }
  0x2a   :  { %v152_v41 = vadd.f32 %v151_v35, %v150_v34  ;;  %v164_v44 = vsel %vm63_vm0, %v144_v39, 0.0  ;;  %v159_v46 = vadd.f32 %v158_v37, %v157_v36  ;;  %v171_v48 = vsel %vm63_vm0, %v145_v43, 0.0 }
  0x2b   :  { %v165_v47 = vrot.slane %v164_v44, 4  ;;  %v172_v50 = vrot.slane %v171_v48, 4  ;;  %v126_v1 = vrot.slane %v125_v52, 1  ;;  %v113_v3 = vadd.f32 %v112_v54, %v111_v40 }
  0x2c   :  { %v153_v49 = vrot.slane %v152_v41, 2  ;;  %v160_v51 = vrot.slane %v159_v46, 2  ;;  %v133_v5 = vrot.slane %v132_v56, 1  ;;  %v120_v7 = vadd.f32 %v119_v58, %v118_v45 }
  0x2d   :  { %v166_v53 = vadd.f32 %v165_v47, %v164_v44  ;;  %v173_v57 = vadd.f32 %v172_v50, %v171_v48  ;;  %v127_v19 = vadd.f32 %v126_v1, %v125_v52  ;;  %v64_v27 = vsel %vm63_vm0, %v389_v8, 0.0 }
  0x2e   :  { %v154_v55 = vadd.f32 %v153_v49, %v152_v41  ;;  %v161_v59 = vadd.f32 %v160_v51, %v159_v46  ;;  %v134_v21 = vadd.f32 %v133_v5, %v132_v56  ;;  %v79_v30 = vrot.slane %v78_v23, 4 }
  0x2f   :  { %v167_v60 = vrot.slane %v166_v53, 2  ;;  %v174_v62 = vrot.slane %v173_v57, 2  ;;  %v65_v32 = vrot.slane %v64_v27, 4  ;;  %v74_v34 = vrot.slane %v73_v28, 2 }
  0x30   :  { %v155_v61 = vrot.slane %v154_v55, 1  ;;  %v162_v0 = vrot.slane %v161_v59, 1  ;;  %v80_v35 = vadd.f32 %v79_v30, %v78_v23  ;;  %v88_v38 = vrot.slane %v87_v33, 2 }
  0x31   :  { %v168_v2 = vadd.f32 %v167_v60, %v166_v53  ;;  %v175_v6 = vadd.f32 %v174_v62, %v173_v57  ;;  %v66_v37 = vadd.f32 %v65_v32, %v64_v27  ;;  %v75_v41 = vadd.f32 %v74_v34, %v73_v28 }
  0x32   :  { %v156_v4 = vadd.f32 %v155_v61, %v154_v55  ;;  %v163_v12 = vadd.f32 %v162_v0, %v161_v59  ;;  %v81_v44 = vrot.slane %v80_v35, 2  ;;  %v89_v48 = vadd.f32 %v88_v38, %v87_v33 }
  0x33   :  { %v169_v13 = vrot.slane %v168_v2, 1  ;;  %v176_v16 = vrot.slane %v175_v6, 1  ;;  %v67_v47 = vrot.slane %v66_v37, 2  ;;  %v76_v53 = vrot.slane %v75_v41, 1 }
  0x34   :  { %v178_v15 = vmul.f32 %v156_v4, %v113_v3  ;;  %v179_v18 = vmul.f32 %v163_v12, %v120_v7  ;;  %v82_v55 = vadd.f32 %v81_v44, %v80_v35  ;;  %v90_v59 = vrot.slane %v89_v48, 1 }
  0x35   :  { %v170_v20 = vadd.f32 %v169_v13, %v168_v2  ;;  %v177_v22 = vadd.f32 %v176_v16, %v175_v6  ;;  %v68_v58 = vadd.f32 %v67_v47, %v66_v37  ;;  %v77_v0 = vadd.f32 %v76_v53, %v75_v41 }
  0x36   :  { %v406_v9 = vmax.f32 %v178_v15, 1e-16  ;;  %v183_v25 = vmax.f32 %v179_v18, 1e-16  ;;  %v83_v3 = vrot.slane %v82_v55, 1  ;;  %v91_v14 = vadd.f32 %v90_v59, %v89_v48 }
  0x37   :  { %v180_v26 = vmul.f32 %v170_v20, %v127_v19  ;;  %v181_v11 = vmul.f32 %v177_v22, %v134_v21  ;;  %v69_v13 = vrot.slane %v68_v58, 1  ;;  %vm248_vm0 = vcmask 1045509  }
  0x38   :  { %277 = vrsqrt.f32 %v406_v9  ;;  %vm202_vm2 = vweird.f32 %v183_v25  ;;  %vm192_vm11 = vweird.f32 %v406_v9  ;;  %v84_v18 = vadd.f32 %v83_v3, %v82_v55 }
  0x39   :  { %279 = vrsqrt.f32 %v183_v25  ;;  %v184_v29 = vmax.f32 %v180_v26, 1e-16  ;;  %v185_v31 = vmax.f32 %v181_v11, 1e-16  ;;  %v70_v21 = vadd.f32 %v69_v13, %v68_v58 }
  0x3b   :  { %281 = vrsqrt.f32 %v184_v29  ;;  %vm212_vm6 = vweird.f32 %v184_v29  ;;  %vm222_vm9 = vweird.f32 %v185_v31 }
  0x3c   :  { %283 = vrsqrt.f32 %v185_v31 }
  0x3e   :  { %v413_v10 = vpop.eup %277 }
  0x3f   :  { %v280_v36 = vpop.eup %279  ;;  %v187_v8 = vmul.f32 %v413_v10, %v406_v9  ;;  %vm193_vm7 = vweird.f32 %v413_v10 }
  0x40   :  { %v197_v39 = vmul.f32 %v280_v36, %v183_v25  ;;  %vm203_vm1 = vweird.f32 %v280_v36  ;;  %vm194_vm12 = vmor %vm192_vm11, %vm193_vm7 }
  0x41   :  { %v282_v40 = vpop.eup %281  ;;  %v188_v42 = vmul.f32 %v413_v10, %v187_v8  ;;  %vm418_vm4 = vmor %vm202_vm2, %vm203_vm1  ;;  %vm250_vm1 = vcmask 1047559  }
  0x42   :  { %v284_v43 = vpop.eup %283  ;;  %v198_v45 = vmul.f32 %v280_v36, %v197_v39  ;;  %v207_v46 = vmul.f32 %v282_v40, %v184_v29  ;;  %vm213_vm3 = vweird.f32 %v282_v40 }
  0x43   :  { %v189_v49 = vmul.f32 0.5, %v188_v42  ;;  %v217_v50 = vmul.f32 %v284_v43, %v185_v31  ;;  %vm223_vm5 = vweird.f32 %v284_v43  ;;  %vm426_vm8 = vmor %vm212_vm6, %vm213_vm3 }
  0x44   :  { %v199_v51 = vmul.f32 0.5, %v198_v45  ;;  %v208_v52 = vmul.f32 %v282_v40, %v207_v46  ;;  %vm224_vm10 = vmor %vm222_vm9, %vm223_vm5 }
  0x45   :  { %v218_v54 = vmul.f32 %v284_v43, %v217_v50  ;;  %v190_v60 = vsub.f32 1.5, %v189_v49 }
  0x46   :  { %v200_v56 = vsub.f32 1.5, %v199_v51  ;;  %v209_v57 = vmul.f32 0.5, %v208_v52 }
  0x47   :  { %v219_v61 = vmul.f32 0.5, %v218_v54  ;;  %v191_v6 = vmul.f32 %v413_v10, %v190_v60 }
  0x48   :  { %v201_v62 = vmul.f32 %v280_v36, %v200_v56  ;;  %v210_v63 = vsub.f32 1.5, %v209_v57 }
  0x49   :  { %v220_v2 = vsub.f32 1.5, %v219_v61  ;;  %v195_v20 = vsel %vm194_vm12, %v413_v10, %v191_v6 }
  0x4a   :  { %v205_v4 = vsel %vm418_vm4, %v280_v36, %v201_v62  ;;  %v211_v5 = vmul.f32 %v282_v40, %v210_v63  ;;  %v226_v25 = vmul.f32 %v195_v20, %v70_v21 }
  0x4b   :  { %v221_v12 = vmul.f32 %v284_v43, %v220_v2  ;;  %v227_v15 = vmul.f32 %v205_v4, %v77_v0 }
  0x4c   :  { %v215_v16 = vsel %vm426_vm8, %v282_v40, %v211_v5 }
  0x4d   :  { %v225_v17 = vsel %vm224_vm10, %v284_v43, %v221_v12  ;;  %v228_v22 = vmul.f32 %v215_v16, %v84_v18  ;;  %v234_v23 = vrot.slane %v227_v15, 6 }
  0x4e   :  { %v229_v19 = vmul.f32 %v225_v17, %v91_v14 }
  0x4f   :  { %v237_v9 = vsel %vm236_vm13, %v226_v25, %v234_v23 }
  0x50   :  { %v235_v24 = vrot.slane %v229_v19, 6 }
  0x52   :  { %v238_v26 = vsel %vm236_vm13, %v228_v22, %v235_v24 }
  0x53   :  { %v243_v27 = vrot.slane %v238_v26, 7 }
  0x55   :  { %v245_v11 = vsel %vm244_vm14, %v243_v27, %v237_v9 }
  0x56   :  { %v247_v28 = vsel %vm246_vm15, %v243_v27, %v245_v11 }
  0x57   :  { %v249_v29 = vsel %vm248_vm0, %v243_v27, %v247_v28 }
  0x58   :  { %v251_v30 = vsel %vm250_vm1, %v243_v27, %v249_v29 }
  0x59   :  { %253 = vst [vmem:[#allocation7] sm:$0xf] %v251_v30 }
  0x5a   :  { %264 = dma.vmem_to_hbm [thread:$0]  %s260_s1, 64, %s262_s23, [#allocation4]  }
  0x5b   :  { %361 = dma.done.wait [#allocation4], 64  }
  0x5c   :  { %362 = vsyncadd [#allocation4], 4294967232 }
  0x5d   :  { %269 = vsyncpa [#allocation3], 1 }
  0x5e   :  { %270 = vsyncpa [#allocation6], 1 }
  0x5f   :  { %271 = vsyncpa [#allocation4], 1 }

</bundles_post_ra>
